<compile_context>
chip_gen: v5e
topology: v5e:2x2
jax: 0.10.0
libtpu: 0.0.40
codegen_flags: <defaults>
</compile_context>

<pallas_src>
import functools

import jax
import jax.numpy as jnp
from jax import lax
from jax.experimental import pallas as pl
from jax.experimental.pallas import tpu as pltpu


def _roll_minor(v, shift, length):
    """Static circular roll along the minor (lane) axis; no-op when shift % L == 0."""
    shift = shift % length
    if shift == 0:
        return v
    return pltpu.roll(v, shift=shift, axis=1)


def _grad_kernel(im_ref, cf_ref, col_ref, out_ref, *, W):
    # im_ref / cf_ref : (bn, L) block of flattened images (L = H*W on lanes)
    # col_ref         : (1, L)  int32, column index x = l % W (precomputed on host)
    # out_ref         : (5, bn, L) block (plane-major output)
    im = im_ref[...]                                  # (bn, L)
    L = im.shape[-1]

    col = col_ref[...]                                # (1, L)
    lin = lax.broadcasted_iota(jnp.int32, (1, L), 1)  # flattened index l
    last_col = col == W - 1                           # x == W-1
    first_col = col == 0                              # x == 0
    last_row = lin >= L - W                           # y == H-1
    first_row = lin < W                               # y == 0

    zero = jnp.zeros((), im.dtype)

    # Shifted views of the flattened image.  Rolls only wrap at positions that
    # are masked below, so per-image boundary handling stays exact.
    im_next_x = _roll_minor(im, L - 1, L)             # im[l + 1]
    im_next_y = _roll_minor(im, L - W, L)             # im[l + W]
    im_prev_x = _roll_minor(im, 1, L)                 # im[l - 1]
    im_prev_y = _roll_minor(im, W, L)                 # im[l - W] (wraps to last row at y == 0)
    im_row_end = _roll_minor(im, L - W + 1, L)        # im[l + W - 1] (same-row last col, used at x == 0)

    h_feature = jnp.where(last_col, zero, im_next_x) - im      # fwd diff along W, zero pad
    w_feature = jnp.where(last_row, zero, im_next_y) - im      # fwd diff along H, zero pad
    h_rolled = jnp.where(first_col, -im_row_end, im - im_prev_x)   # torch.roll(h, 1, dims=3)
    w_rolled = jnp.where(first_row, zero, im) - im_prev_y          # torch.roll(w, 1, dims=2)

    out_ref[0] = cf_ref[...]
    out_ref[1] = h_feature
    out_ref[2] = w_feature
    out_ref[3] = h_rolled
    out_ref[4] = w_rolled


def _pick_block_rows(n_images, plane_elems, itemsize):
    """Images per grid step.  ~1 MiB per (bn, L) tile keeps the ~14 pipeline
    buffers + in-body temporaries comfortably inside v7x's 64 MiB VMEM while
    still amortizing the ~0.35 us/step grid overhead."""
    tile_budget_bytes = 1 << 20
    rows = max(1, tile_budget_bytes // (plane_elems * itemsize))
    if rows >= n_images:
        bn = n_images
        if n_images >= 16:
            # Keep >= 2 grid steps so v7x's two TensorCores both get work
            # (no-op cost on single-TC v5e/v6e).
            bn = max(8, ((n_images // 2) // 8) * 8)
    elif rows >= 8:
        bn = (rows // 8) * 8      # 2nd-minor block dim must be %8==0 or == full dim
    else:
        bn = min(8, n_images)
    return bn


def gradient_calculator(im, color_feature, *, layout="planes"):
    """im, color_feature: (N, C, H, W).

    layout="planes": returns (5, N, C, H, W)  -- performant, no post-kernel transpose.
    layout="torch" : returns (N, C, H, W, 5)  -- exact PyTorch layout (costs an
                     extra XLA transpose pass over the 5x-sized output).
    """
    N, C, H, W = im.shape
    B, L = N * C, H * W
    dt = im.dtype
    itemsize = jnp.dtype(dt).itemsize

    # Free (metadata-only) reshapes: arrays are row-major contiguous.
    im2 = im.reshape(B, L)
    cf2 = color_feature.reshape(B, L)
    col = jnp.tile(jnp.arange(W, dtype=jnp.int32), H).reshape(1, L)

    bn = _pick_block_rows(B, L, itemsize)
    grid = (pl.cdiv(B, bn),)

    # NOTE: if downstream tolerates bf16, casting im/color_feature (and out_shape)
    # to bfloat16 halves HBM traffic of this purely bandwidth-bound kernel.
    out = pl.pallas_call(
        functools.partial(_grad_kernel, W=W),
        out_shape=jax.ShapeDtypeStruct((5, B, L), dt),
        grid_spec=pltpu.PrefetchScalarGridSpec(
            num_scalar_prefetch=0,
            grid=grid,
            in_specs=[
                pl.BlockSpec((bn, L), lambda i: (i, 0)),
                pl.BlockSpec((bn, L), lambda i: (i, 0)),
                pl.BlockSpec((1, L), lambda i: (0, 0)),
            ],
            out_specs=pl.BlockSpec((5, bn, L), lambda i: (0, i, 0)),
        ),
        compiler_params=pltpu.CompilerParams(
            dimension_semantics=("parallel",),
            vmem_limit_bytes=48 * 1024 * 1024,
        ),
        cost_estimate=pl.CostEstimate(
            flops=9 * B * L,
            transcendentals=0,
            bytes_accessed=7 * B * L * itemsize + L * 4,
        ),
    )(im2, cf2, col)

    planes = out.reshape(5, N, C, H, W)   # metadata-only reshape
    if layout == "planes":
        return planes
    if layout == "torch":
        return jnp.moveaxis(planes, 0, -1)
    raise ValueError(f"unknown layout: {layout!r}")


def _reference(im, cf):
    # Pure-JAX reference mirroring the PyTorch forward.
    h = jnp.pad(im[:, :, :, 1:], ((0, 0), (0, 0), (0, 0), (0, 1))) - im
    w = jnp.pad(im[:, :, 1:, :], ((0, 0), (0, 0), (0, 1), (0, 0))) - im
    rh = jnp.roll(h, 1, axis=3)
    rw = jnp.roll(w, 1, axis=2)
    return jnp.stack([cf, h, w, rh, rw], axis=-1)


if __name__ == "__main__":
    # self.feature starts as zeros and every slice [...,0..4] is overwritten in
    # forward, so no learned state survives -> purely functional kernel.
    key = jax.random.PRNGKey(0)
    shapes = [
        (2, 3, 16, 16),   # original demo shape (single grid step)
        (4, 8, 16, 16),   # B=32 -> multi-step grid, batched (bn=16) blocks
        (1, 1, 32, 48),   # non-square plane, L = 1536 lanes
    ]
    for shape in shapes:
        key, k_im, k_cf = jax.random.split(key, 3)
        im = jax.random.normal(k_im, shape, dtype=jnp.float32)
        color_feature = jax.random.normal(k_cf, shape, dtype=jnp.float32)
        ref = _reference(im, color_feature)

        planes = jax.block_until_ready(gradient_calculator(im, color_feature))
        assert planes.shape == (5, *shape)
        assert jnp.allclose(planes, jnp.moveaxis(ref, -1, 0), atol=1e-5, rtol=1e-5)

        feat = jax.block_until_ready(
            gradient_calculator(im, color_feature, layout="torch"))
        assert feat.shape == (*shape, 5)
        assert jnp.allclose(feat, ref, atol=1e-5, rtol=1e-5)

    print("KERNEL_OK")
</pallas_src>

<mosaic_0001>
module attributes {stable_mosaic.version = 11 : i64} {
  func.func @_grad_kernel(%arg0: i32, %arg1: memref<6x256xf32, #tpu.memory_space<vmem>>, %arg2: memref<6x256xf32, #tpu.memory_space<vmem>>, %arg3: memref<1x256xi32, #tpu.memory_space<vmem>>, %arg4: memref<5x6x256xf32, #tpu.memory_space<vmem>>) attributes {dimension_semantics = [#tpu.dimension_semantics<parallel>], iteration_bounds = array<i64: 1>, scalar_prefetch = 0 : i64, scratch_operands = 0 : i64, tpu.core_type = #tpu.core_type<tc>, window_params = [{transform_indices = @transform_0, window_bounds = array<i64: 6, 256>}, {transform_indices = @transform_1, window_bounds = array<i64: 6, 256>}, {pipeline_mode = #tpu.pipeline_mode<synchronous>, transform_indices = @transform_2, window_bounds = array<i64: 1, 256>}, {transform_indices = @transform_3, window_bounds = array<i64: 5, 6, 256>}]} {
    %c0 = arith.constant 0 : index
    %c0_0 = arith.constant 0 : index
    %0 = vector.load %arg1[%c0, %c0_0] : memref<6x256xf32, #tpu.memory_space<vmem>>, vector<6x256xf32>
    %c0_1 = arith.constant 0 : index
    %c0_2 = arith.constant 0 : index
    %1 = vector.load %arg3[%c0_1, %c0_2] : memref<1x256xi32, #tpu.memory_space<vmem>>, vector<1x256xi32>
    %2 = tpu.iota {dimensions = array<i32: 1>} : vector<1x256xi32>
    %c15_i32 = arith.constant 15 : i32
    %3 = vector.broadcast %c15_i32 : i32 to vector<1x256xi32>
    %4 = arith.cmpi eq, %1, %3 : vector<1x256xi32>
    %c0_i32 = arith.constant 0 : i32
    %5 = vector.broadcast %c0_i32 : i32 to vector<1x256xi32>
    %6 = arith.cmpi eq, %1, %5 : vector<1x256xi32>
    %c240_i32 = arith.constant 240 : i32
    %7 = vector.broadcast %c240_i32 : i32 to vector<1x256xi32>
    %8 = arith.cmpi sge, %2, %7 : vector<1x256xi32>
    %c16_i32 = arith.constant 16 : i32
    %9 = vector.broadcast %c16_i32 : i32 to vector<1x256xi32>
    %10 = arith.cmpi slt, %2, %9 : vector<1x256xi32>
    %c255_i32 = arith.constant 255 : i32
    %11 = tpu.dynamic_rotate %0 by %c255_i32 dim 1 : vector<6x256xf32>, i32 -> vector<6x256xf32>
    %c240_i32_3 = arith.constant 240 : i32
    %12 = tpu.dynamic_rotate %0 by %c240_i32_3 dim 1 : vector<6x256xf32>, i32 -> vector<6x256xf32>
    %c1_i32 = arith.constant 1 : i32
    %13 = tpu.dynamic_rotate %0 by %c1_i32 dim 1 : vector<6x256xf32>, i32 -> vector<6x256xf32>
    %c16_i32_4 = arith.constant 16 : i32
    %14 = tpu.dynamic_rotate %0 by %c16_i32_4 dim 1 : vector<6x256xf32>, i32 -> vector<6x256xf32>
    %c241_i32 = arith.constant 241 : i32
    %15 = tpu.dynamic_rotate %0 by %c241_i32 dim 1 : vector<6x256xf32>, i32 -> vector<6x256xf32>
    %cst = arith.constant 0.000000e+00 : f32
    %16 = vector.shape_cast %4 : vector<1x256xi1> to vector<1x256xi1>
    %17 = vector.broadcast %16 : vector<1x256xi1> to vector<6x256xi1>
    %18 = vector.broadcast %cst : f32 to vector<6x256xf32>
    %19 = arith.select %17, %18, %11 : vector<6x256xi1>, vector<6x256xf32>
    %20 = arith.subf %19, %0 : vector<6x256xf32>
    %cst_5 = arith.constant 0.000000e+00 : f32
    %21 = vector.shape_cast %8 : vector<1x256xi1> to vector<1x256xi1>
    %22 = vector.broadcast %21 : vector<1x256xi1> to vector<6x256xi1>
    %23 = vector.broadcast %cst_5 : f32 to vector<6x256xf32>
    %24 = arith.select %22, %23, %12 : vector<6x256xi1>, vector<6x256xf32>
    %25 = arith.subf %24, %0 : vector<6x256xf32>
    %cst_6 = arith.constant 0.000000e+00 : f32
    %26 = vector.broadcast %cst_6 : f32 to vector<6x256xf32>
    %27 = arith.subf %26, %15 : vector<6x256xf32>
    %28 = arith.subf %0, %13 : vector<6x256xf32>
    %29 = vector.shape_cast %6 : vector<1x256xi1> to vector<1x256xi1>
    %30 = vector.broadcast %29 : vector<1x256xi1> to vector<6x256xi1>
    %31 = arith.select %30, %27, %28 : vector<6x256xi1>, vector<6x256xf32>
    %cst_7 = arith.constant 0.000000e+00 : f32
    %32 = vector.shape_cast %10 : vector<1x256xi1> to vector<1x256xi1>
    %33 = vector.broadcast %32 : vector<1x256xi1> to vector<6x256xi1>
    %34 = vector.broadcast %cst_7 : f32 to vector<6x256xf32>
    %35 = arith.select %33, %34, %0 : vector<6x256xi1>, vector<6x256xf32>
    %36 = arith.subf %35, %14 : vector<6x256xf32>
    %c0_8 = arith.constant 0 : index
    %c0_9 = arith.constant 0 : index
    %37 = vector.load %arg2[%c0_8, %c0_9] : memref<6x256xf32, #tpu.memory_space<vmem>>, vector<6x256xf32>
    %c0_10 = arith.constant 0 : index
    %c0_11 = arith.constant 0 : index
    %c0_12 = arith.constant 0 : index
    %38 = vector.load %arg4[%c0_10, %c0_11, %c0_12] : memref<5x6x256xf32, #tpu.memory_space<vmem>>, vector<1x6x256xf32>
    %39 = vector.shape_cast %38 : vector<1x6x256xf32> to vector<6x256xf32>
    %40 = vector.shape_cast %37 : vector<6x256xf32> to vector<1x6x256xf32>
    tpu.vector_store %arg4[%c0_10, %c0_11, %c0_12], %40 {strides = array<i32>} : memref<5x6x256xf32, #tpu.memory_space<vmem>>, vector<1x6x256xf32>,
    %c1 = arith.constant 1 : index
    %c0_13 = arith.constant 0 : index
    %c0_14 = arith.constant 0 : index
    %41 = vector.load %arg4[%c1, %c0_13, %c0_14] : memref<5x6x256xf32, #tpu.memory_space<vmem>>, vector<1x6x256xf32>
    %42 = vector.shape_cast %41 : vector<1x6x256xf32> to vector<6x256xf32>
    %43 = vector.shape_cast %20 : vector<6x256xf32> to vector<1x6x256xf32>
    tpu.vector_store %arg4[%c1, %c0_13, %c0_14], %43 {strides = array<i32>} : memref<5x6x256xf32, #tpu.memory_space<vmem>>, vector<1x6x256xf32>,
    %c2 = arith.constant 2 : index
    %c0_15 = arith.constant 0 : index
    %c0_16 = arith.constant 0 : index
    %44 = vector.load %arg4[%c2, %c0_15, %c0_16] : memref<5x6x256xf32, #tpu.memory_space<vmem>>, vector<1x6x256xf32>
    %45 = vector.shape_cast %44 : vector<1x6x256xf32> to vector<6x256xf32>
    %46 = vector.shape_cast %25 : vector<6x256xf32> to vector<1x6x256xf32>
    tpu.vector_store %arg4[%c2, %c0_15, %c0_16], %46 {strides = array<i32>} : memref<5x6x256xf32, #tpu.memory_space<vmem>>, vector<1x6x256xf32>,
    %c3 = arith.constant 3 : index
    %c0_17 = arith.constant 0 : index
    %c0_18 = arith.constant 0 : index
    %47 = vector.load %arg4[%c3, %c0_17, %c0_18] : memref<5x6x256xf32, #tpu.memory_space<vmem>>, vector<1x6x256xf32>
    %48 = vector.shape_cast %47 : vector<1x6x256xf32> to vector<6x256xf32>
    %49 = vector.shape_cast %31 : vector<6x256xf32> to vector<1x6x256xf32>
    tpu.vector_store %arg4[%c3, %c0_17, %c0_18], %49 {strides = array<i32>} : memref<5x6x256xf32, #tpu.memory_space<vmem>>, vector<1x6x256xf32>,
    %c4 = arith.constant 4 : index
    %c0_19 = arith.constant 0 : index
    %c0_20 = arith.constant 0 : index
    %50 = vector.load %arg4[%c4, %c0_19, %c0_20] : memref<5x6x256xf32, #tpu.memory_space<vmem>>, vector<1x6x256xf32>
    %51 = vector.shape_cast %50 : vector<1x6x256xf32> to vector<6x256xf32>
    %52 = vector.shape_cast %36 : vector<6x256xf32> to vector<1x6x256xf32>
    tpu.vector_store %arg4[%c4, %c0_19, %c0_20], %52 {strides = array<i32>} : memref<5x6x256xf32, #tpu.memory_space<vmem>>, vector<1x6x256xf32>,
    return
  }
  func.func @transform_0(%arg0: i32) -> (i32, i32) {
    %c0_i32 = arith.constant 0 : i32
    %c0_i32_0 = arith.constant 0 : i32
    return %arg0, %c0_i32 : i32, i32
  }
  func.func @transform_1(%arg0: i32) -> (i32, i32) {
    %c0_i32 = arith.constant 0 : i32
    %c0_i32_0 = arith.constant 0 : i32
    return %arg0, %c0_i32 : i32, i32
  }
  func.func @transform_2(%arg0: i32) -> (i32, i32) {
    %c0_i32 = arith.constant 0 : i32
    %c0_i32_0 = arith.constant 0 : i32
    %c0_i32_1 = arith.constant 0 : i32
    return %c0_i32, %c0_i32_0 : i32, i32
  }
  func.func @transform_3(%arg0: i32) -> (i32, i32, i32) {
    %c0_i32 = arith.constant 0 : i32
    %c0_i32_0 = arith.constant 0 : i32
    %c0_i32_1 = arith.constant 0 : i32
    return %c0_i32, %arg0, %c0_i32_0 : i32, i32, i32
  }
}

</mosaic_0001>

<bundles_post_ra>
// kernel: tpu_custom_call.1
= control target key start
LH: loop header
LB: loop body
LE: loop exit
PB: predicated region body
PF: predicated region fallthrough
CT: control target
= control target key end

     0   :  { %8 = vsyncpa [#allocation3], 0  ;;  %s363_s0 = inlined_call_operand.hbm [shape: f32[6,256], index: 0, kind: input, shape index: {}]   ;;  %s364_s1 = inlined_call_operand.hbm [shape: f32[6,256], index: 1, kind: input, shape index: {}]   ;;  %s365_s2 = inlined_call_operand.hbm [shape: s32[1,256], index: 2, kind: input, shape index: {}]   ;;  %s366_s3 = inlined_call_operand.hbm [shape: f32[5,6,256], index: 3, kind: output, shape index: {}]  }
   0x1   :  { %9 = vsyncpa [#allocation6], 0  ;;  %s27_s14 = sshll.u32 %s364_s1, 4  ;;  %s28_s14 = int_to_ptr.hbm [resolvable:$true] %s27_s14 }
   0x2   :  { %10 = vsyncpa [#allocation4], 0  ;;  %s287_s15 = smov [#allocation5]   ;;  %s16_s19 = sshll.u32 %s363_s0, 4  ;;  %s17_s19 = int_to_ptr.hbm [resolvable:$true] %s16_s19 }
   0x3   :  { %s29_s16 = sshll.u32 %s287_s15, 4  ;;  %s288_s20 = smov [#allocation2]   ;;  %s30_s16 = int_to_ptr.vmem [resolvable:$true] %s29_s16 }
   0x4   :  { %32 = dma.hbm_to_vmem [thread:$0]  %s28_s14, 256, %s30_s16, [#allocation6]  }
   0x5   :  { %s18_s21 = sshll.u32 %s288_s20, 4  ;;  %s38_s24 = sshll.u32 %s365_s2, 4  ;;  %s19_s21 = int_to_ptr.vmem [resolvable:$true] %s18_s21  ;;  %s39_s24 = int_to_ptr.hbm [resolvable:$true] %s38_s24 }
   0x6   :  { %21 = dma.hbm_to_vmem [thread:$0]  %s17_s19, 256, %s19_s21, [#allocation3]  }
   0x7   :  { %s289_s1 = smov [#allocation7]  }
   0x8   :  { %s40_s25 = sshll.u32 %s289_s1, 4  ;;  %s41_s25 = int_to_ptr.vmem [resolvable:$true] %s40_s25 }
   0x9   :  { %43 = dma.hbm_to_vmem [thread:$0]  %s39_s24, 32, %s41_s25, [#allocation6]  }
   0xa   :  { %281 = dma.done.wait [#allocation3], 256  }
   0xb   :  { %282 = vsyncadd [#allocation3], 4294967040 }
   0xc   :  { %283 = dma.done.wait [#allocation6], 288  }
   0xd   :  { %284 = vsyncadd [#allocation6], 4294967008  ;;  %v327_v0 = vld [vmem:[#allocation2] sm:$0x3f]  ;;  %s290_s0 = smov 112   ;;  %s291_s26 = smov 127   ;;  %v59_v3 = vlaneseq }
   0xe   :  { %75 = vrot.lane.b32.xlu1 %v327_v0, %s290_s0  ;;  %68 = vrot.lane.b32.xlu0 %v327_v0, %s291_s26  ;;  %s292_s2 = smov 1   ;;  %v332_v1 = vld [vmem:[#allocation2 + $0x8] sm:$0x3f]  ;;  %s293_s27 = smov 113   ;;  %v58_v2 = vld [vmem:[#allocation7] sm:$0x3] }
   0xf   :  { %82 = vrot.lane.b32.xlu2 %v327_v0, %s292_s2  ;;  %s294_s28 = smov 16   ;;  %vm62_vm0 = vcmp.eq.s32.totalorder %v58_v2, 15  ;;  %v138_v4 = vld [vmem:[#allocation5] sm:$0x3f]  ;;  %v139_v5 = vld [vmem:[#allocation5 + $0x8] sm:$0x3f] }
  0x10   :  { %140 = vst [vmem:[#allocation8] sm:$0x3f] %v138_v4  ;;  %v343_v6 = vand.u32 127, %v59_v3  ;;  %v295_v9 = vmov 0   ;;  %vm63_vm1 = vcmp.eq.s32.totalorder %v58_v2, 0  ;;  %s296_s29 = smov [#allocation8]  }
  0x11   :  { %141 = vst [vmem:[#allocation8 + $0x8] sm:$0x3f] %v139_v5  ;;  %v102_v10 = vsel %vm62_vm0, 1, %v295_v9  ;;  %v123_v16 = vsel %vm63_vm1, 1, %v295_v9  ;;  %s158_s30 = sshll.u32 %s296_s29, 4  ;;  %s160_s6 = sshll.u32 %s366_s3, 4  ;;  %s159_s30 = int_to_ptr.vmem [resolvable:$true] %s158_s30  ;;  %s161_s6 = int_to_ptr.hbm [resolvable:$true] %s160_s6 }
  0x12   :  { %v61_v12 = vadd.s32 128, %v343_v6  ;;  %v103_v13 = vperm.slane %v102_v10, 0  ;;  %v104_v14 = vperm.slane %v102_v10, 1  ;;  %vm79_vm2 = vcmp.lt.s32.totalorder %v343_v6, 112  ;;  %s297_s7 = smov 256  }
  0x13   :  { %vm72_vm3 = vcmp.lt.s32.totalorder %v343_v6, 127  ;;  %vm86_vm7 = vcmp.lt.s32.totalorder %v343_v6, 1  ;;  %v124_v30 = vperm.slane %v123_v16, 0  ;;  %v125_v31 = vperm.slane %v123_v16, 1 }
  0x14   :  { %vm65_vm4 = vcmp.ge.s32.totalorder %v61_v12, 240  ;;  %vm105_vm5 = vcmp.eq.s32.totalorder %v103_v13, 1  ;;  %vm106_vm6 = vcmp.eq.s32.totalorder %v104_v14, 1  ;;  %vm99_vm8 = vcmp.lt.s32.totalorder %v343_v6, 113 }
  0x15   :  { %vm126_vm9 = vcmp.eq.s32.totalorder %v124_v30, 1  ;;  %vm127_vm10 = vcmp.eq.s32.totalorder %v125_v31, 1  ;;  %vm66_vm11 = vcmp.lt.s32.totalorder %v343_v6, 16 }
  0x16   :  { %77 = vrot.lane.b32.xlu1 %v332_v1, %s290_s0  ;;  %70 = vrot.lane.b32.xlu0 %v332_v1, %s291_s26  ;;  %v134_v45 = vsel %vm66_vm11, 0.0, %v327_v0 }
  0x17   :  { %84 = vrot.lane.b32.xlu2 %v332_v1, %s292_s2 }
  0x1e   :  { %97 = vrot.lane.b32.xlu1 %v332_v1, %s293_s27  ;;  %95 = vrot.lane.b32.xlu0 %v327_v0, %s293_s27 }
  0x1f   :  { %89 = vrot.lane.b32.xlu2 %v327_v0, %s294_s28 }
  0x26   :  { %91 = vrot.lane.b32.xlu0 %v332_v1, %s294_s28 }
  0x69   :  { %v83_v11 = vpop.permute.xlu2 %82 }
  0x71   :  { %v85_v29 = vpop.permute.xlu2 %84 }
  0x72   :  { %v87_v32 = vsel %vm86_vm7, %v83_v11, %v85_v29  ;;  %v88_v33 = vsel %vm86_vm7, %v85_v29, %v83_v11 }
  0x73   :  { %v121_v38 = vsub.f32 %v327_v0, %v88_v33  ;;  %v122_v39 = vsub.f32 %v332_v1, %v87_v32 }
  0x79   :  { %v90_v44 = vpop.permute.xlu2 %89 }
  0x80   :  { %v76_v7 = vpop.permute.xlu1 %75  ;;  %v69_v8 = vpop.permute.xlu0 %68 }
  0x88   :  { %v78_v15 = vpop.permute.xlu1 %77  ;;  %v71_v17 = vpop.permute.xlu0 %70 }
  0x89   :  { %v80_v18 = vsel %vm79_vm2, %v76_v7, %v78_v15  ;;  %v81_v19 = vsel %vm79_vm2, %v78_v15, %v76_v7  ;;  %v73_v20 = vsel %vm72_vm3, %v69_v8, %v71_v17  ;;  %v74_v21 = vsel %vm72_vm3, %v71_v17, %v69_v8 }
  0x8a   :  { %v116_v22 = vsel %vm65_vm4, 0.0, %v81_v19  ;;  %v117_v23 = vsub.f32 %v80_v18, %v327_v0  ;;  %v107_v24 = vsel %vm105_vm5, 0.0, %v73_v20  ;;  %v108_v25 = vsel %vm106_vm6, 0.0, %v74_v21 }
  0x8b   :  { %v118_v26 = vsub.f32 %v116_v22, %v332_v1  ;;  %v109_v27 = vsub.f32 %v107_v24, %v327_v0  ;;  %v110_v28 = vsub.f32 %v108_v25, %v332_v1 }
  0x8c   :  { %146 = vst [vmem:[#allocation8 + $0x20] sm:$0x3f] %v117_v23 }
  0x8d   :  { %147 = vst [vmem:[#allocation8 + $0x28] sm:$0x3f] %v118_v26 }
  0x8e   :  { %143 = vst [vmem:[#allocation8 + $0x10] sm:$0x3f] %v109_v27 }
  0x8f   :  { %144 = vst [vmem:[#allocation8 + $0x18] sm:$0x3f] %v110_v28 }
  0x90   :  { %v98_v34 = vpop.permute.xlu1 %97  ;;  %v96_v35 = vpop.permute.xlu0 %95 }
  0x91   :  { %v100_v36 = vsel %vm99_vm8, %v96_v35, %v98_v34  ;;  %v101_v37 = vsel %vm99_vm8, %v98_v34, %v96_v35 }
  0x92   :  { %v119_v40 = vsub.f32 0.0, %v100_v36  ;;  %v120_v41 = vsub.f32 0.0, %v101_v37 }
  0x94   :  { %v128_v42 = vsel %vm126_vm9, %v119_v40, %v121_v38  ;;  %v129_v43 = vsel %vm127_vm10, %v120_v41, %v122_v39 }
  0x95   :  { %149 = vst [vmem:[#allocation8 + $0x30] sm:$0x3f] %v128_v42 }
  0x96   :  { %150 = vst [vmem:[#allocation8 + $0x38] sm:$0x3f] %v129_v43 }
  0x98   :  { %v92_v46 = vpop.permute.xlu0 %91 }
  0x99   :  { %v93_v47 = vsel %vm66_vm11, %v90_v44, %v92_v46  ;;  %v94_v48 = vsel %vm66_vm11, %v92_v46, %v90_v44 }
  0x9a   :  { %v136_v49 = vsub.f32 %v134_v45, %v94_v48  ;;  %v137_v50 = vsub.f32 %v332_v1, %v93_v47 }
  0x9c   :  { %152 = vst [vmem:[#allocation8 + $0x40] sm:$0x3f] %v136_v49 }
  0x9d   :  { %153 = vst [vmem:[#allocation8 + $0x48] sm:$0x3f] %v137_v50 }
  0x9e   :  { %166 = dma.vmem_to_hbm [thread:$0]  %s159_s30, 1280, %s161_s6, [#allocation4], %s297_s7, %s297_s7, %s294_s28  }
  0x9f   :  { %285 = dma.done.wait [#allocation4], 1280  }
  0xa0   :  { %286 = vsyncadd [#allocation4], 4294966016 }
  0xa1   :  { %171 = vsyncpa [#allocation3], 1 }
  0xa2   :  { %172 = vsyncpa [#allocation6], 1 }
  0xa3   :  { %173 = vsyncpa [#allocation4], 1 }

</bundles_post_ra>
